<compile_context>
chip_gen: v5e
topology: v5e:2x2
jax: 0.10.0
libtpu: 0.0.40
codegen_flags: <defaults>
</compile_context>

<pallas_src>
import functools
import math

import jax
import jax.numpy as jnp
from jax.experimental import pallas as pl
from jax.experimental.pallas import tpu as pltpu

HIDDEN = 100      # real ffn_hidden_size
HID_PAD = 128     # padded hidden size (lane-aligned)
LANE = 128
SUBLANE = 8
DEFAULT_BLOCK_B = 512   # batch tile (multiple of 8); ~2-3 MB VMEM incl. double buffers


def _round_up(x, m):
    return (x + m - 1) // m * m


def _mlp_kernel(x_ref, *refs):
    """One batch tile: 6x (bf16 matmul -> +bias(f32) -> relu), then the final
    hidden->1 layer as an elementwise-mul + lane reduce, then sigmoid."""
    o_ref = refs[-1]
    p = refs[:-1]                        # w0,b0, w1,b1, ..., w5,b5, w_out_row, b_out

    h_bf16 = x_ref[...]                  # (TB, d_in_pad) bf16
    h_f32 = None
    for li in range(6):                  # static unroll over the 6 relu layers
        w = p[2 * li][...]               # (K, 128) bf16
        b = p[2 * li + 1][...]           # (1, 128) f32
        acc = jnp.dot(h_bf16, w, preferred_element_type=jnp.float32) + b
        h_f32 = jnp.maximum(acc, 0.0)
        h_bf16 = h_f32.astype(jnp.bfloat16)

    w_out = p[12][...]                   # (1, 128) f32 (only first 100 lanes real)
    b_out = p[13][...]                   # (1, 1) f32
    logits = jnp.sum(h_f32 * w_out, axis=-1, keepdims=True) + b_out   # (TB, 1)
    o_ref[...] = jax.nn.sigmoid(logits)


def _xavier_normal(key, fan_in, fan_out):
    std = math.sqrt(2.0 / (fan_in + fan_out))
    return jax.random.normal(key, (fan_in, fan_out), dtype=jnp.float32) * std


def init_dnn_params(key, char_size, embedding_size):
    """Mirrors initialize_weights: xavier_normal for 2-D params, zeros for biases.
    Weights are (in, out), zero-padded to TPU-friendly shapes; matmul weights are
    stored in bf16, biases and the final weight row in f32."""
    d_in = char_size * embedding_size
    d_in_pad = _round_up(d_in, LANE)
    keys = jax.random.split(key, 7)

    params = []
    # first: (d_in, 100) -> zero-padded to (d_in_pad, 128)
    w = _xavier_normal(keys[0], d_in, HIDDEN)
    w = jnp.pad(w, ((0, d_in_pad - d_in), (0, HID_PAD - HIDDEN)))
    params.append((w.astype(jnp.bfloat16), jnp.zeros((1, HID_PAD), jnp.float32)))
    # hidden1..5: (100, 100) -> (128, 128); padded rows/cols are zero
    for i in range(1, 6):
        w = _xavier_normal(keys[i], HIDDEN, HIDDEN)
        w = jnp.pad(w, ((0, HID_PAD - HIDDEN), (0, HID_PAD - HIDDEN)))
        params.append((w.astype(jnp.bfloat16), jnp.zeros((1, HID_PAD), jnp.float32)))
    # out: (100, 1) -> stored as a (1, 128) f32 row for the in-kernel lane reduce
    w = _xavier_normal(keys[6], HIDDEN, 1)
    w_row = jnp.pad(w[:, 0], (0, HID_PAD - HIDDEN)).reshape(1, HID_PAD)
    params.append((w_row, jnp.zeros((1, 1), jnp.float32)))
    return params


@functools.partial(jax.jit,
                   static_argnames=("char_size", "embedding_size", "block_b"))
def dnn_forward(x, params, *, char_size, embedding_size, block_b=DEFAULT_BLOCK_B):
    """Pallas implementation of DNN.forward. x: (B, char_size, embedding_size)."""
    d_in = char_size * embedding_size
    d_in_pad = _round_up(d_in, LANE)
    x2d = x.reshape(-1, d_in).astype(jnp.float32)   # == X.view(-1, C*E)
    b = x2d.shape[0]

    # Batch tile: multiple of 8, capped at block_b; pad batch to a tile multiple.
    tb = min(block_b, _round_up(b, SUBLANE))
    b_pad = _round_up(b, tb)
    x2d = jnp.pad(x2d, ((0, b_pad - b), (0, d_in_pad - d_in))).astype(jnp.bfloat16)
    n_tiles = b_pad // tb

    flat_args = [x2d]
    in_specs = [pl.BlockSpec((tb, d_in_pad), lambda i: (i, 0))]
    for w, bias in params:
        flat_args.extend([w, bias])
        # constant block index => weights/biases stay VMEM-resident across tiles
        in_specs.append(pl.BlockSpec(w.shape, lambda i: (0, 0)))
        in_specs.append(pl.BlockSpec(bias.shape, lambda i: (0, 0)))

    weight_bytes = sum(w.size * w.dtype.itemsize + bb.size * bb.dtype.itemsize
                       for w, bb in params)
    cost = pl.CostEstimate(
        flops=2 * b_pad * (d_in_pad * HID_PAD + 5 * HID_PAD * HID_PAD + HID_PAD),
        transcendentals=b_pad,
        bytes_accessed=x2d.size * x2d.dtype.itemsize + weight_bytes + b_pad * 4,
    )

    out = pl.pallas_call(
        _mlp_kernel,
        out_shape=jax.ShapeDtypeStruct((b_pad, 1), jnp.float32),
        grid=(n_tiles,),
        in_specs=in_specs,
        out_specs=pl.BlockSpec((tb, 1), lambda i: (i, 0)),
        compiler_params=pltpu.CompilerParams(
            dimension_semantics=("parallel",)),   # megacore split on v7x
        cost_estimate=cost,
    )(*flat_args)
    # real output_size == 1; drop any batch padding
    return out[:b]


def _reference_forward(x, params, char_size, embedding_size):
    """Pure-JAX reference mirroring the kernel's bf16-matmul / f32-accumulate math."""
    d_in = char_size * embedding_size
    d_in_pad = _round_up(d_in, LANE)
    h = x.reshape(-1, d_in).astype(jnp.float32)
    h = jnp.pad(h, ((0, 0), (0, d_in_pad - d_in)))
    hb = h.astype(jnp.bfloat16)
    hf = None
    for w, bias in params[:-1]:
        hf = jnp.maximum(
            jnp.dot(hb, w, preferred_element_type=jnp.float32) + bias, 0.0)
        hb = hf.astype(jnp.bfloat16)
    w_row, b_out = params[-1]
    logits = jnp.sum(hf * w_row, axis=-1, keepdims=True) + b_out
    return jax.nn.sigmoid(logits)


if __name__ == "__main__":
    char_size = 8
    embedding_size = 16   # first_linear_dim = 128
    batch = 8

    key = jax.random.PRNGKey(0)
    k_x, k_p = jax.random.split(key)
    x = jax.random.normal(k_x, (batch, char_size, embedding_size), dtype=jnp.float32)
    params = init_dnn_params(k_p, char_size, embedding_size)

    y = dnn_forward(x, params, char_size=char_size, embedding_size=embedding_size)
    jax.block_until_ready(y)

    y_ref = _reference_forward(x, params, char_size, embedding_size)
    assert y.shape == (batch, 1), y.shape
    assert jnp.allclose(y, y_ref, atol=1e-3, rtol=1e-3), "mismatch vs reference"
    print("KERNEL_OK")
</pallas_src>

<mosaic_0001>
module attributes {stable_mosaic.version = 11 : i64} {
  func.func @_mlp_kernel(%arg0: i32, %arg1: memref<8x128xbf16, #tpu.memory_space<vmem>>, %arg2: memref<128x128xbf16, #tpu.memory_space<vmem>>, %arg3: memref<1x128xf32, #tpu.memory_space<vmem>>, %arg4: memref<128x128xbf16, #tpu.memory_space<vmem>>, %arg5: memref<1x128xf32, #tpu.memory_space<vmem>>, %arg6: memref<128x128xbf16, #tpu.memory_space<vmem>>, %arg7: memref<1x128xf32, #tpu.memory_space<vmem>>, %arg8: memref<128x128xbf16, #tpu.memory_space<vmem>>, %arg9: memref<1x128xf32, #tpu.memory_space<vmem>>, %arg10: memref<128x128xbf16, #tpu.memory_space<vmem>>, %arg11: memref<1x128xf32, #tpu.memory_space<vmem>>, %arg12: memref<128x128xbf16, #tpu.memory_space<vmem>>, %arg13: memref<1x128xf32, #tpu.memory_space<vmem>>, %arg14: memref<1x128xf32, #tpu.memory_space<vmem>>, %arg15: memref<1x1xf32, #tpu.memory_space<vmem>>, %arg16: memref<8x1xf32, #tpu.memory_space<vmem>>) attributes {dimension_semantics = [#tpu.dimension_semantics<parallel>], iteration_bounds = array<i64: 1>, scalar_prefetch = 0 : i64, scratch_operands = 0 : i64, tpu.core_type = #tpu.core_type<tc>, window_params = [{transform_indices = @transform_0, window_bounds = array<i64: 8, 128>}, {pipeline_mode = #tpu.pipeline_mode<synchronous>, transform_indices = @transform_1, window_bounds = array<i64: 128, 128>}, {pipeline_mode = #tpu.pipeline_mode<synchronous>, transform_indices = @transform_2, window_bounds = array<i64: 1, 128>}, {pipeline_mode = #tpu.pipeline_mode<synchronous>, transform_indices = @transform_3, window_bounds = array<i64: 128, 128>}, {pipeline_mode = #tpu.pipeline_mode<synchronous>, transform_indices = @transform_4, window_bounds = array<i64: 1, 128>}, {pipeline_mode = #tpu.pipeline_mode<synchronous>, transform_indices = @transform_5, window_bounds = array<i64: 128, 128>}, {pipeline_mode = #tpu.pipeline_mode<synchronous>, transform_indices = @transform_6, window_bounds = array<i64: 1, 128>}, {pipeline_mode = #tpu.pipeline_mode<synchronous>, transform_indices = @transform_7, window_bounds = array<i64: 128, 128>}, {pipeline_mode = #tpu.pipeline_mode<synchronous>, transform_indices = @transform_8, window_bounds = array<i64: 1, 128>}, {pipeline_mode = #tpu.pipeline_mode<synchronous>, transform_indices = @transform_9, window_bounds = array<i64: 128, 128>}, {pipeline_mode = #tpu.pipeline_mode<synchronous>, transform_indices = @transform_10, window_bounds = array<i64: 1, 128>}, {pipeline_mode = #tpu.pipeline_mode<synchronous>, transform_indices = @transform_11, window_bounds = array<i64: 128, 128>}, {pipeline_mode = #tpu.pipeline_mode<synchronous>, transform_indices = @transform_12, window_bounds = array<i64: 1, 128>}, {pipeline_mode = #tpu.pipeline_mode<synchronous>, transform_indices = @transform_13, window_bounds = array<i64: 1, 128>}, {pipeline_mode = #tpu.pipeline_mode<synchronous>, transform_indices = @transform_14, window_bounds = array<i64: 1, 1>}, {transform_indices = @transform_15, window_bounds = array<i64: 8, 1>}]} {
    %c0 = arith.constant 0 : index
    %c0_0 = arith.constant 0 : index
    %0 = vector.load %arg1[%c0, %c0_0] : memref<8x128xbf16, #tpu.memory_space<vmem>>, vector<8x128xbf16>
    %c0_1 = arith.constant 0 : index
    %c0_2 = arith.constant 0 : index
    %1 = vector.load %arg2[%c0_1, %c0_2] : memref<128x128xbf16, #tpu.memory_space<vmem>>, vector<128x128xbf16>
    %c0_3 = arith.constant 0 : index
    %c0_4 = arith.constant 0 : index
    %2 = vector.load %arg3[%c0_3, %c0_4] : memref<1x128xf32, #tpu.memory_space<vmem>>, vector<1x128xf32>
    %cst = arith.constant dense<0.000000e+00> : vector<8x128xf32>
    %3 = tpu.matmul %0, %1, %cst {dimension_numbers = #tpu.dot_dimension_numbers<[1], [0], [0], [1], [0, 0, 1, 1], [], []>} : vector<8x128xbf16>, vector<128x128xbf16>, vector<8x128xf32> -> vector<8x128xf32>
    %4 = vector.broadcast %2 : vector<1x128xf32> to vector<8x128xf32>
    %5 = arith.addf %3, %4 : vector<8x128xf32>
    %cst_5 = arith.constant 0.000000e+00 : f32
    %6 = vector.broadcast %cst_5 : f32 to vector<8x128xf32>
    %7 = arith.maximumf %5, %6 : vector<8x128xf32>
    %8 = arith.truncf %7 : vector<8x128xf32> to vector<8x128xbf16>
    %c0_6 = arith.constant 0 : index
    %c0_7 = arith.constant 0 : index
    %9 = vector.load %arg4[%c0_6, %c0_7] : memref<128x128xbf16, #tpu.memory_space<vmem>>, vector<128x128xbf16>
    %c0_8 = arith.constant 0 : index
    %c0_9 = arith.constant 0 : index
    %10 = vector.load %arg5[%c0_8, %c0_9] : memref<1x128xf32, #tpu.memory_space<vmem>>, vector<1x128xf32>
    %cst_10 = arith.constant dense<0.000000e+00> : vector<8x128xf32>
    %11 = tpu.matmul %8, %9, %cst_10 {dimension_numbers = #tpu.dot_dimension_numbers<[1], [0], [0], [1], [0, 0, 1, 1], [], []>} : vector<8x128xbf16>, vector<128x128xbf16>, vector<8x128xf32> -> vector<8x128xf32>
    %12 = vector.broadcast %10 : vector<1x128xf32> to vector<8x128xf32>
    %13 = arith.addf %11, %12 : vector<8x128xf32>
    %cst_11 = arith.constant 0.000000e+00 : f32
    %14 = vector.broadcast %cst_11 : f32 to vector<8x128xf32>
    %15 = arith.maximumf %13, %14 : vector<8x128xf32>
    %16 = arith.truncf %15 : vector<8x128xf32> to vector<8x128xbf16>
    %c0_12 = arith.constant 0 : index
    %c0_13 = arith.constant 0 : index
    %17 = vector.load %arg6[%c0_12, %c0_13] : memref<128x128xbf16, #tpu.memory_space<vmem>>, vector<128x128xbf16>
    %c0_14 = arith.constant 0 : index
    %c0_15 = arith.constant 0 : index
    %18 = vector.load %arg7[%c0_14, %c0_15] : memref<1x128xf32, #tpu.memory_space<vmem>>, vector<1x128xf32>
    %cst_16 = arith.constant dense<0.000000e+00> : vector<8x128xf32>
    %19 = tpu.matmul %16, %17, %cst_16 {dimension_numbers = #tpu.dot_dimension_numbers<[1], [0], [0], [1], [0, 0, 1, 1], [], []>} : vector<8x128xbf16>, vector<128x128xbf16>, vector<8x128xf32> -> vector<8x128xf32>
    %20 = vector.broadcast %18 : vector<1x128xf32> to vector<8x128xf32>
    %21 = arith.addf %19, %20 : vector<8x128xf32>
    %cst_17 = arith.constant 0.000000e+00 : f32
    %22 = vector.broadcast %cst_17 : f32 to vector<8x128xf32>
    %23 = arith.maximumf %21, %22 : vector<8x128xf32>
    %24 = arith.truncf %23 : vector<8x128xf32> to vector<8x128xbf16>
    %c0_18 = arith.constant 0 : index
    %c0_19 = arith.constant 0 : index
    %25 = vector.load %arg8[%c0_18, %c0_19] : memref<128x128xbf16, #tpu.memory_space<vmem>>, vector<128x128xbf16>
    %c0_20 = arith.constant 0 : index
    %c0_21 = arith.constant 0 : index
    %26 = vector.load %arg9[%c0_20, %c0_21] : memref<1x128xf32, #tpu.memory_space<vmem>>, vector<1x128xf32>
    %cst_22 = arith.constant dense<0.000000e+00> : vector<8x128xf32>
    %27 = tpu.matmul %24, %25, %cst_22 {dimension_numbers = #tpu.dot_dimension_numbers<[1], [0], [0], [1], [0, 0, 1, 1], [], []>} : vector<8x128xbf16>, vector<128x128xbf16>, vector<8x128xf32> -> vector<8x128xf32>
    %28 = vector.broadcast %26 : vector<1x128xf32> to vector<8x128xf32>
    %29 = arith.addf %27, %28 : vector<8x128xf32>
    %cst_23 = arith.constant 0.000000e+00 : f32
    %30 = vector.broadcast %cst_23 : f32 to vector<8x128xf32>
    %31 = arith.maximumf %29, %30 : vector<8x128xf32>
    %32 = arith.truncf %31 : vector<8x128xf32> to vector<8x128xbf16>
    %c0_24 = arith.constant 0 : index
    %c0_25 = arith.constant 0 : index
    %33 = vector.load %arg10[%c0_24, %c0_25] : memref<128x128xbf16, #tpu.memory_space<vmem>>, vector<128x128xbf16>
    %c0_26 = arith.constant 0 : index
    %c0_27 = arith.constant 0 : index
    %34 = vector.load %arg11[%c0_26, %c0_27] : memref<1x128xf32, #tpu.memory_space<vmem>>, vector<1x128xf32>
    %cst_28 = arith.constant dense<0.000000e+00> : vector<8x128xf32>
    %35 = tpu.matmul %32, %33, %cst_28 {dimension_numbers = #tpu.dot_dimension_numbers<[1], [0], [0], [1], [0, 0, 1, 1], [], []>} : vector<8x128xbf16>, vector<128x128xbf16>, vector<8x128xf32> -> vector<8x128xf32>
    %36 = vector.broadcast %34 : vector<1x128xf32> to vector<8x128xf32>
    %37 = arith.addf %35, %36 : vector<8x128xf32>
    %cst_29 = arith.constant 0.000000e+00 : f32
    %38 = vector.broadcast %cst_29 : f32 to vector<8x128xf32>
    %39 = arith.maximumf %37, %38 : vector<8x128xf32>
    %40 = arith.truncf %39 : vector<8x128xf32> to vector<8x128xbf16>
    %c0_30 = arith.constant 0 : index
    %c0_31 = arith.constant 0 : index
    %41 = vector.load %arg12[%c0_30, %c0_31] : memref<128x128xbf16, #tpu.memory_space<vmem>>, vector<128x128xbf16>
    %c0_32 = arith.constant 0 : index
    %c0_33 = arith.constant 0 : index
    %42 = vector.load %arg13[%c0_32, %c0_33] : memref<1x128xf32, #tpu.memory_space<vmem>>, vector<1x128xf32>
    %cst_34 = arith.constant dense<0.000000e+00> : vector<8x128xf32>
    %43 = tpu.matmul %40, %41, %cst_34 {dimension_numbers = #tpu.dot_dimension_numbers<[1], [0], [0], [1], [0, 0, 1, 1], [], []>} : vector<8x128xbf16>, vector<128x128xbf16>, vector<8x128xf32> -> vector<8x128xf32>
    %44 = vector.broadcast %42 : vector<1x128xf32> to vector<8x128xf32>
    %45 = arith.addf %43, %44 : vector<8x128xf32>
    %cst_35 = arith.constant 0.000000e+00 : f32
    %46 = vector.broadcast %cst_35 : f32 to vector<8x128xf32>
    %47 = arith.maximumf %45, %46 : vector<8x128xf32>
    %c0_36 = arith.constant 0 : index
    %c0_37 = arith.constant 0 : index
    %48 = vector.load %arg14[%c0_36, %c0_37] : memref<1x128xf32, #tpu.memory_space<vmem>>, vector<1x128xf32>
    %c0_38 = arith.constant 0 : index
    %c0_39 = arith.constant 0 : index
    %49 = vector.load %arg15[%c0_38, %c0_39] : memref<1x1xf32, #tpu.memory_space<vmem>>, vector<1x1xf32>
    %50 = vector.broadcast %48 : vector<1x128xf32> to vector<8x128xf32>
    %51 = arith.mulf %47, %50 : vector<8x128xf32>
    %cst_40 = arith.constant dense<0.000000e+00> : vector<8xf32>
    %52 = vector.multi_reduction <add>, %51, %cst_40 [1] : vector<8x128xf32> to vector<8xf32>
    %53 = vector.shape_cast %52 : vector<8xf32> to vector<8x1xf32>
    %54 = vector.broadcast %49 : vector<1x1xf32> to vector<8x1xf32>
    %55 = arith.addf %53, %54 : vector<8x1xf32>
    %56 = arith.negf %55 : vector<8x1xf32>
    %57 = math.exp %56 : vector<8x1xf32>
    %cst_41 = arith.constant 1.000000e+00 : f32
    %58 = vector.broadcast %cst_41 : f32 to vector<8x1xf32>
    %59 = arith.addf %58, %57 : vector<8x1xf32>
    %60 = arith.divf %58, %59 : vector<8x1xf32>
    %c0_42 = arith.constant 0 : index
    %c0_43 = arith.constant 0 : index
    %61 = vector.load %arg16[%c0_42, %c0_43] : memref<8x1xf32, #tpu.memory_space<vmem>>, vector<8x1xf32>
    tpu.vector_store %arg16[%c0_42, %c0_43], %60 {strides = array<i32>} : memref<8x1xf32, #tpu.memory_space<vmem>>, vector<8x1xf32>,
    return
  }
  func.func @transform_0(%arg0: i32) -> (i32, i32) {
    %c0_i32 = arith.constant 0 : i32
    %c0_i32_0 = arith.constant 0 : i32
    return %arg0, %c0_i32 : i32, i32
  }
  func.func @transform_1(%arg0: i32) -> (i32, i32) {
    %c0_i32 = arith.constant 0 : i32
    %c0_i32_0 = arith.constant 0 : i32
    %c0_i32_1 = arith.constant 0 : i32
    return %c0_i32, %c0_i32_0 : i32, i32
  }
  func.func @transform_2(%arg0: i32) -> (i32, i32) {
    %c0_i32 = arith.constant 0 : i32
    %c0_i32_0 = arith.constant 0 : i32
    %c0_i32_1 = arith.constant 0 : i32
    return %c0_i32, %c0_i32_0 : i32, i32
  }
  func.func @transform_3(%arg0: i32) -> (i32, i32) {
    %c0_i32 = arith.constant 0 : i32
    %c0_i32_0 = arith.constant 0 : i32
    %c0_i32_1 = arith.constant 0 : i32
    return %c0_i32, %c0_i32_0 : i32, i32
  }
  func.func @transform_4(%arg0: i32) -> (i32, i32) {
    %c0_i32 = arith.constant 0 : i32
    %c0_i32_0 = arith.constant 0 : i32
    %c0_i32_1 = arith.constant 0 : i32
    return %c0_i32, %c0_i32_0 : i32, i32
  }
  func.func @transform_5(%arg0: i32) -> (i32, i32) {
    %c0_i32 = arith.constant 0 : i32
    %c0_i32_0 = arith.constant 0 : i32
    %c0_i32_1 = arith.constant 0 : i32
    return %c0_i32, %c0_i32_0 : i32, i32
  }
  func.func @transform_6(%arg0: i32) -> (i32, i32) {
    %c0_i32 = arith.constant 0 : i32
    %c0_i32_0 = arith.constant 0 : i32
    %c0_i32_1 = arith.constant 0 : i32
    return %c0_i32, %c0_i32_0 : i32, i32
  }
  func.func @transform_7(%arg0: i32) -> (i32, i32) {
    %c0_i32 = arith.constant 0 : i32
    %c0_i32_0 = arith.constant 0 : i32
    %c0_i32_1 = arith.constant 0 : i32
    return %c0_i32, %c0_i32_0 : i32, i32
  }
  func.func @transform_8(%arg0: i32) -> (i32, i32) {
    %c0_i32 = arith.constant 0 : i32
    %c0_i32_0 = arith.constant 0 : i32
    %c0_i32_1 = arith.constant 0 : i32
    return %c0_i32, %c0_i32_0 : i32, i32
  }
  func.func @transform_9(%arg0: i32) -> (i32, i32) {
    %c0_i32 = arith.constant 0 : i32
    %c0_i32_0 = arith.constant 0 : i32
    %c0_i32_1 = arith.constant 0 : i32
    return %c0_i32, %c0_i32_0 : i32, i32
  }
  func.func @transform_10(%arg0: i32) -> (i32, i32) {
    %c0_i32 = arith.constant 0 : i32
    %c0_i32_0 = arith.constant 0 : i32
    %c0_i32_1 = arith.constant 0 : i32
    return %c0_i32, %c0_i32_0 : i32, i32
  }
  func.func @transform_11(%arg0: i32) -> (i32, i32) {
    %c0_i32 = arith.constant 0 : i32
    %c0_i32_0 = arith.constant 0 : i32
    %c0_i32_1 = arith.constant 0 : i32
    return %c0_i32, %c0_i32_0 : i32, i32
  }
  func.func @transform_12(%arg0: i32) -> (i32, i32) {
    %c0_i32 = arith.constant 0 : i32
    %c0_i32_0 = arith.constant 0 : i32
    %c0_i32_1 = arith.constant 0 : i32
    return %c0_i32, %c0_i32_0 : i32, i32
  }
  func.func @transform_13(%arg0: i32) -> (i32, i32) {
    %c0_i32 = arith.constant 0 : i32
    %c0_i32_0 = arith.constant 0 : i32
    %c0_i32_1 = arith.constant 0 : i32
    return %c0_i32, %c0_i32_0 : i32, i32
  }
  func.func @transform_14(%arg0: i32) -> (i32, i32) {
    %c0_i32 = arith.constant 0 : i32
    %c0_i32_0 = arith.constant 0 : i32
    %c0_i32_1 = arith.constant 0 : i32
    return %c0_i32, %c0_i32_0 : i32, i32
  }
  func.func @transform_15(%arg0: i32) -> (i32, i32) {
    %c0_i32 = arith.constant 0 : i32
    %c0_i32_0 = arith.constant 0 : i32
    return %arg0, %c0_i32 : i32, i32
  }
}

</mosaic_0001>

<bundles_post_ra>
// kernel: dnn_forward.1
= control target key start
LH: loop header
LB: loop body
LE: loop exit
PB: predicated region body
PF: predicated region fallthrough
CT: control target
= control target key end

     0   :  { %s1229_s0 = inlined_call_operand.vmem [shape: bf16[8,128], index: 0, kind: input, shape index: {}]   ;;  %s1230_s1 = inlined_call_operand.vmem [shape: bf16[128,128], index: 1, kind: input, shape index: {}]   ;;  %s1231_s2 = inlined_call_operand.vmem [shape: f32[1,128], index: 2, kind: input, shape index: {}]   ;;  %s1232_s3 = inlined_call_operand.vmem [shape: bf16[128,128], index: 3, kind: input, shape index: {}]   ;;  %s1233_s4 = inlined_call_operand.vmem [shape: f32[1,128], index: 4, kind: input, shape index: {}]   ;;  %s1234_s5 = inlined_call_operand.hbm [shape: bf16[128,128], index: 5, kind: input, shape index: {}]   ;;  %s1235_s6 = inlined_call_operand.vmem [shape: f32[1,128], index: 6, kind: input, shape index: {}]   ;;  %s1236_s7 = inlined_call_operand.hbm [shape: bf16[128,128], index: 7, kind: input, shape index: {}]   ;;  %s1237_s8 = inlined_call_operand.vmem [shape: f32[1,128], index: 8, kind: input, shape index: {}]   ;;  %s1238_s9 = inlined_call_operand.hbm [shape: bf16[128,128], index: 9, kind: input, shape index: {}]   ;;  %s1239_s10 = inlined_call_operand.vmem [shape: f32[1,128], index: 10, kind: input, shape index: {}]   ;;  %s1240_s11 = inlined_call_operand.hbm [shape: bf16[128,128], index: 11, kind: input, shape index: {}]   ;;  %s1241_s12 = inlined_call_operand.vmem [shape: f32[1,128], index: 12, kind: input, shape index: {}]   ;;  %s1242_s13 = inlined_call_operand.hbm [shape: f32[1,128], index: 13, kind: input, shape index: {}]   ;;  %s1243_s14 = inlined_call_operand.<no memory space> [shape: f32[1,1], index: 14, kind: input, shape index: {}]   ;;  %s1244_s15 = inlined_call_operand.vmem [shape: f32[8,1], index: 15, kind: output, shape index: {}]  }
   0x1   :  { %v20_v0 = vstv %s1243_s14 }
   0x2   :  { %21 = vst [vmem:[#allocation2] sm:$0x1] %v20_v0 }
   0x3   :  { %22 = vsyncpa [#allocation4], 0 }
   0x4   :  { %23 = vsyncpa [#allocation6], 0 }
   0x5   :  { %24 = vsyncpa [#allocation9], 0  ;;  %s54_s22 = sshll.u32 %s1236_s7, 4  ;;  %s1052_s23 = smov [#allocation5]   ;;  %s55_s22 = int_to_ptr.hbm [resolvable:$true] %s54_s22 }
   0x6   :  { %s56_s24 = sshll.u32 %s1052_s23, 4  ;;  %s84_s27 = sshll.u32 %s1240_s11, 4  ;;  %s57_s24 = int_to_ptr.vmem [resolvable:$true] %s56_s24  ;;  %s85_s27 = int_to_ptr.hbm [resolvable:$true] %s84_s27 }
   0x7   :  { %s1053_s28 = smov 64   ;;  %s1054_s29 = smov 4  }
   0x8   :  { %62 = dma.hbm_to_vmem [thread:$0]  %s55_s22, 1024, %s57_s24, [#allocation6], %s1053_s28, %s1053_s28, %s1054_s29  }
   0x9   :  { %s1055_s14 = smov [#allocation8]   ;;  %s39_s18 = sshll.u32 %s1234_s5, 4  ;;  %s40_s18 = int_to_ptr.hbm [resolvable:$true] %s39_s18 }
   0xa   :  { %s86_s30 = sshll.u32 %s1055_s14, 4  ;;  %s69_s20 = sshll.u32 %s1238_s9, 4  ;;  %s87_s30 = int_to_ptr.vmem [resolvable:$true] %s86_s30  ;;  %s70_s20 = int_to_ptr.hbm [resolvable:$true] %s69_s20 }
   0xb   :  { %92 = dma.hbm_to_vmem [thread:$0]  %s85_s27, 1024, %s87_s30, [#allocation9], %s1053_s28, %s1053_s28, %s1054_s29  }
   0xc   :  { %s1056_s21 = smov [#allocation3]   ;;  %s1057_s11 = smov [#allocation7]  }
   0xd   :  { %s41_s23 = sshll.u32 %s1056_s21, 4  ;;  %s71_s22 = sshll.u32 %s1057_s11, 4  ;;  %s42_s23 = int_to_ptr.vmem [resolvable:$true] %s41_s23  ;;  %s72_s22 = int_to_ptr.vmem [resolvable:$true] %s71_s22 }
   0xe   :  { %47 = dma.hbm_to_vmem [thread:$0]  %s40_s18, 1024, %s42_s23, [#allocation4], %s1053_s28, %s1053_s28, %s1054_s29  }
   0xf   :  { %s100_s26 = sshll.u32 %s1242_s13, 4  ;;  %s1058_s5 = smov [#allocation10]   ;;  %s101_s26 = int_to_ptr.hbm [resolvable:$true] %s100_s26 }
  0x10   :  { %77 = dma.hbm_to_vmem [thread:$0]  %s70_s20, 1024, %s72_s22, [#allocation6], %s1053_s28, %s1053_s28, %s1054_s29  }
  0x11   :  { %s102_s27 = sshll.u32 %s1058_s5, 4  ;;  %s103_s27 = int_to_ptr.vmem [resolvable:$true] %s102_s27 }
  0x12   :  { %105 = dma.hbm_to_vmem [thread:$0]  %s101_s26, 16, %s103_s27, [#allocation9]  }
  0x13   :  { %1046 = dma.done.wait [#allocation4], 1024  }
  0x14   :  { %1047 = vsyncadd [#allocation4], 4294966272 }
  0x15   :  { %1048 = dma.done.wait [#allocation6], 2048  }
  0x16   :  { %1049 = vsyncadd [#allocation6], 4294965248 }
  0x17   :  { %1050 = dma.done.wait [#allocation9], 1040  }
  0x18   :  { %1051 = vsyncadd [#allocation9], 4294966256  ;;  %v866_v1 = vld [vmem:[%s1230_s1 + $0x38] sm:$0xff]  ;;  %v865_v2 = vld [vmem:[%s1230_s1 + $0x30] sm:$0xff]  ;;  %vm657_vm3 = vcmask 7168  }
  0x19   :  { %197 = vmatpush.bf16.msra.mxu0 %v866_v1  ;;  %v874_v3 = vld [vmem:[%s1232_s3 + $0x38] sm:$0xff]  ;;  %v864_v4 = vld [vmem:[%s1230_s1 + $0x28] sm:$0xff]  ;;  %v873_v5 = vld [vmem:[%s1232_s3 + $0x30] sm:$0xff] }
  0x1a   :  { %280 = vmatpush.bf16.msra.mxu1 %v874_v3  ;;  %v872_v6 = vld [vmem:[%s1232_s3 + $0x28] sm:$0xff]  ;;  %v863_v7 = vld [vmem:[%s1230_s1 + $0x20] sm:$0xff]  ;;  %v862_v9 = vld [vmem:[%s1230_s1 + $0x18] sm:$0xff] }
  0x1b   :  { %v871_v8 = vld [vmem:[%s1232_s3 + $0x20] sm:$0xff]  ;;  %v870_v10 = vld [vmem:[%s1232_s3 + $0x18] sm:$0xff]  ;;  %v861_v11 = vld [vmem:[%s1230_s1 + $0x10] sm:$0xff] }
  0x1c   :  { %v869_v12 = vld [vmem:[%s1232_s3 + $0x10] sm:$0xff]  ;;  %v860_v13 = vld [vmem:[%s1230_s1 + $0x8] sm:$0xff]  ;;  %v859_v14 = vld [vmem:[%s1230_s1] sm:$0xff] }
  0x1d   :  { %198 = vmatpush.bf16.msra.mxu0 %v865_v2  ;;  %v128_v15 = vld [vmem:[%s1229_s0] sm:$0xf]  ;;  %v868_v16 = vld [vmem:[%s1232_s3 + $0x8] sm:$0xff]  ;;  %v881_v19 = vld [vmem:[#allocation3 + $0x30] sm:$0xff] }
  0x1e   :  { %281 = vmatpush.bf16.msra.mxu1 %v873_v5  ;;  %v867_v17 = vld [vmem:[%s1232_s3] sm:$0xff]  ;;  %v880_v20 = vld [vmem:[#allocation3 + $0x28] sm:$0xff]  ;;  %v877_v23 = vld [vmem:[#allocation3 + $0x10] sm:$0xff] }
  0x1f   :  { %v882_v18 = vld [vmem:[#allocation3 + $0x38] sm:$0xff]  ;;  %v879_v21 = vld [vmem:[#allocation3 + $0x20] sm:$0xff]  ;;  %v876_v30 = vld [vmem:[#allocation3 + $0x8] sm:$0xff] }
  0x20   :  { %363 = vmatpush.bf16.msra.mxu2 %v882_v18  ;;  %v878_v22 = vld [vmem:[#allocation3 + $0x18] sm:$0xff]  ;;  %v875_v31 = vld [vmem:[#allocation3] sm:$0xff]  ;;  %v889_v33 = vld [vmem:[#allocation5 + $0x30] sm:$0xff] }
  0x21   :  { %199 = vmatpush.bf16.msra.mxu0 %v864_v4  ;;  %v914_v24 = vld [vmem:[%s1231_s2] ss:$0 sm:$0xff]  ;;  %v888_v34 = vld [vmem:[#allocation5 + $0x28] sm:$0xff]  ;;  %v887_v35 = vld [vmem:[#allocation5 + $0x20] sm:$0xff] }
  0x22   :  { %282 = vmatpush.bf16.msra.mxu1 %v872_v6  ;;  %v890_v32 = vld [vmem:[#allocation5 + $0x38] sm:$0xff]  ;;  %v885_v37 = vld [vmem:[#allocation5 + $0x10] sm:$0xff]  ;;  %v884_v44 = vld [vmem:[#allocation5 + $0x8] sm:$0xff] }
  0x23   :  { %446 = vmatpush.bf16.msra.mxu3 %v890_v32  ;;  %v886_v36 = vld [vmem:[#allocation5 + $0x18] sm:$0xff]  ;;  %v883_v45 = vld [vmem:[#allocation5] sm:$0xff]  ;;  %v897_v47 = vld [vmem:[#allocation7 + $0x30] sm:$0xff] }
  0x24   :  { %364 = vmatpush.bf16.msra.mxu2 %v881_v19  ;;  %v915_v38 = vld [vmem:[%s1233_s4] ss:$0 sm:$0xff]  ;;  %v896_v48 = vld [vmem:[#allocation7 + $0x28] sm:$0xff]  ;;  %v895_v49 = vld [vmem:[#allocation7 + $0x20] sm:$0xff] }
  0x25   :  { %200 = vmatpush.bf16.msra.mxu0 %v863_v7  ;;  %v898_v46 = vld [vmem:[#allocation7 + $0x38] sm:$0xff]  ;;  %v893_v51 = vld [vmem:[#allocation7 + $0x10] sm:$0xff]  ;;  %v892_v58 = vld [vmem:[#allocation7 + $0x8] sm:$0xff] }
  0x26   :  { %283 = vmatpush.bf16.msra.mxu1 %v871_v8  ;;  %v894_v50 = vld [vmem:[#allocation7 + $0x18] sm:$0xff]  ;;  %v891_v59 = vld [vmem:[#allocation7] sm:$0xff]  ;;  %v905_v61 = vld [vmem:[#allocation8 + $0x30] sm:$0xff] }
  0x27   :  { %447 = vmatpush.bf16.msra.mxu3 %v889_v33  ;;  %v916_v52 = vld [vmem:[%s1235_s6] ss:$0 sm:$0xff]  ;;  %v904_v62 = vld [vmem:[#allocation8 + $0x28] sm:$0xff]  ;;  %v903_v63 = vld [vmem:[#allocation8 + $0x20] sm:$0xff] }
  0x28   :  { %365 = vmatpush.bf16.msra.mxu2 %v880_v20  ;;  %v906_v60 = vld [vmem:[#allocation8 + $0x38] sm:$0xff]  ;;  %v901_v1 = vld [vmem:[#allocation8 + $0x10] sm:$0xff]  ;;  %v900_v8 = vld [vmem:[#allocation8 + $0x8] sm:$0xff] }
  0x29   :  { %201 = vmatpush.bf16.msra.mxu0 %v862_v9  ;;  %v902_v0 = vld [vmem:[#allocation8 + $0x18] sm:$0xff]  ;;  %v899_v9 = vld [vmem:[#allocation8] sm:$0xff] }
  0x2a   :  { %284 = vmatpush.bf16.msra.mxu1 %v870_v10  ;;  %v917_v2 = vld [vmem:[%s1237_s8] ss:$0 sm:$0xff]  ;;  %v920_v19 = vld [vmem:[#allocation10] ss:$0 sm:$0xff] }
  0x2b   :  { %448 = vmatpush.bf16.msra.mxu3 %v888_v34  ;;  %v918_v10 = vld [vmem:[%s1239_s10] ss:$0 sm:$0xff] }
  0x2c   :  { %366 = vmatpush.bf16.msra.mxu2 %v879_v21 }
  0x2d   :  { %202 = vmatpush.bf16.msra.mxu0 %v861_v11 }
  0x2e   :  { %285 = vmatpush.bf16.msra.mxu1 %v869_v12 }
  0x2f   :  { %449 = vmatpush.bf16.msra.mxu3 %v887_v35 }
  0x30   :  { %367 = vmatpush.bf16.msra.mxu2 %v878_v22 }
  0x31   :  { %203 = vmatpush.bf16.msra.mxu0 %v860_v13 }
  0x32   :  { %286 = vmatpush.bf16.msra.mxu1 %v868_v16  ;;  %v919_v16 = vld [vmem:[%s1241_s12] ss:$0 sm:$0xff] }
  0x33   :  { %450 = vmatpush.bf16.msra.mxu3 %v886_v36 }
  0x34   :  { %368 = vmatpush.bf16.msra.mxu2 %v877_v23  ;;  %v921_v23 = vld [vmem:[#allocation2] ss:$0 sm:$0xff] }
  0x35   :  { %204 = vmatpush.bf16.msra.mxu0 %v859_v14 }
  0x36   :  { %287 = vmatpush.bf16.msra.mxu1 %v867_v17 }
  0x37   :  { %451 = vmatpush.bf16.msra.mxu3 %v885_v37 }
  0x38   :  { %205 = vmatmul.bf16.vlgmr.msra.gmra.mxu0 %v128_v15  ;;  %369 = vmatpush.bf16.msra.mxu2 %v876_v30 }
  0x39   :  { %529 = vmatpush.bf16.msrb.mxu0 %v898_v46 }
  0x3a   :  { %612 = vmatpush.bf16.msrb.mxu1 %v906_v60 }
  0x3b   :  { %452 = vmatpush.bf16.msra.mxu3 %v884_v44 }
  0x3c   :  { %370 = vmatpush.bf16.msra.mxu2 %v875_v31 }
  0x3d   :  { %530 = vmatpush.bf16.msrb.mxu0 %v897_v47 }
  0x3e   :  { %613 = vmatpush.bf16.msrb.mxu1 %v905_v61 }
  0x3f   :  { %453 = vmatpush.bf16.msra.mxu3 %v883_v45 }
  0x41   :  { %531 = vmatpush.bf16.msrb.mxu0 %v896_v48 }
  0x42   :  { %614 = vmatpush.bf16.msrb.mxu1 %v904_v62 }
  0x45   :  { %532 = vmatpush.bf16.msrb.mxu0 %v895_v49 }
  0x46   :  { %615 = vmatpush.bf16.msrb.mxu1 %v903_v63 }
  0x49   :  { %533 = vmatpush.bf16.msrb.mxu0 %v894_v50 }
  0x4a   :  { %616 = vmatpush.bf16.msrb.mxu1 %v902_v0 }
  0x4d   :  { %534 = vmatpush.bf16.msrb.mxu0 %v893_v51 }
  0x4e   :  { %617 = vmatpush.bf16.msrb.mxu1 %v901_v1 }
  0x51   :  { %535 = vmatpush.bf16.msrb.mxu0 %v892_v58 }
  0x52   :  { %618 = vmatpush.bf16.msrb.mxu1 %v900_v8 }
  0x55   :  { %536 = vmatpush.bf16.msrb.mxu0 %v891_v59 }
  0x56   :  { %619 = vmatpush.bf16.msrb.mxu1 %v899_v9 }
  0xb5   :  { %v206_v25 = vpop.f32.mrf.mxu0 }
  0xb6   :  { %v207_v26 = vadd.f32 %v914_v24, %v206_v25 }
  0xb8   :  { %v210_v27 = vmax.f32 %v207_v26, 0.0 }
  0xba   :  { %v211_v28 = vpack.c.bf16 %v210_v27, %v210_v27 }
  0xbc   :  { %288 = vmatmul.bf16.vlgmr.msra.gmra.mxu1 %v211_v28 }
  0xbd   :  { %v208_v29 = vpop.f32.mrf.mxu0 }
 0x139   :  { %v289_v39 = vpop.f32.mrf.mxu1 }
 0x13a   :  { %v290_v40 = vadd.f32 %v915_v38, %v289_v39 }
 0x13c   :  { %v293_v41 = vmax.f32 %v290_v40, 0.0 }
 0x13e   :  { %v294_v42 = vpack.c.bf16 %v293_v41, %v293_v41 }
 0x140   :  { %371 = vmatmul.bf16.vlgmr.msra.gmra.mxu2 %v294_v42 }
 0x141   :  { %v291_v43 = vpop.f32.mrf.mxu1 }
 0x1c3   :  { %v372_v53 = vpop.f32.mrf.mxu2 }
 0x1c4   :  { %v373_v54 = vadd.f32 %v916_v52, %v372_v53 }
 0x1c6   :  { %v376_v55 = vmax.f32 %v373_v54, 0.0 }
 0x1c8   :  { %v377_v56 = vpack.c.bf16 %v376_v55, %v376_v55 }
 0x1ca   :  { %454 = vmatmul.bf16.vlgmr.msra.gmra.mxu3 %v377_v56 }
 0x1cb   :  { %v374_v57 = vpop.f32.mrf.mxu2 }
 0x24d   :  { %v455_v3 = vpop.f32.mrf.mxu3 }
 0x24e   :  { %v456_v4 = vadd.f32 %v917_v2, %v455_v3 }
 0x250   :  { %v459_v5 = vmax.f32 %v456_v4, 0.0 }
 0x252   :  { %v460_v6 = vpack.c.bf16 %v459_v5, %v459_v5 }
 0x254   :  { %537 = vmatmul.bf16.vlgmr.msrb.gmra.mxu0 %v460_v6 }
 0x255   :  { %v457_v7 = vpop.f32.mrf.mxu3 }
 0x2d1   :  { %v538_v11 = vpop.f32.mrf.mxu0 }
 0x2d2   :  { %v539_v12 = vadd.f32 %v918_v10, %v538_v11 }
 0x2d4   :  { %v542_v13 = vmax.f32 %v539_v12, 0.0 }
 0x2d6   :  { %v543_v14 = vpack.c.bf16 %v542_v13, %v542_v13 }
 0x2d8   :  { %620 = vmatmul.bf16.vlgmr.msrb.gmra.mxu1 %v543_v14 }
 0x2d9   :  { %v540_v15 = vpop.f32.mrf.mxu0 }
 0x355   :  { %v621_v17 = vpop.f32.mrf.mxu1 }
 0x356   :  { %v622_v18 = vadd.f32 %v919_v16, %v621_v17 }
 0x358   :  { %v625_v20 = vmax.f32 %v622_v18, 0.0 }
 0x35a   :  { %v631_v21 = vmul.f32 %v920_v19, %v625_v20 }
 0x35c   :  { %632 = vadd.xlane.f32.xlu0 %v631_v21 }
 0x35d   :  { %v623_v22 = vpop.f32.mrf.mxu1 }
 0x3cf   :  { %v633_v24 = vpop.xlane.xlu0 %632 }
 0x3d0   :  { %v637_v25 = vadd.f32 %v921_v23, %v633_v24 }
 0x3d2   :  { %v858_v26 = vmul.f32 -1.442695, %v637_v25 }
 0x3d4   :  { %922 = vpow2.f32 %v858_v26 }
 0x3da   :  { %v923_v27 = vpop.eup %922 }
 0x3db   :  { %v641_v28 = vadd.f32 1.0, %v923_v27 }
 0x3dd   :  { %924 = vrcp.f32 %v641_v28  ;;  %v653_v32 = vand.u32 2147483648, %v641_v28  ;;  %v651_v34 = vand.u32 2147483647, %v641_v28  ;;  %vm647_vm1 = vweird.f32 %v641_v28 }
 0x3df   :  { %v654_v36 = vor.u32 1.1754944e-38, %v653_v32  ;;  %vm652_vm4 = vcmp.eq.f32.partialorder %v651_v34, 8.507059e+37 }
 0x3e3   :  { %v925_v29 = vpop.eup %924 }
 0x3e4   :  { %v643_v30 = vmul.f32 %v925_v29, %v641_v28  ;;  %vm648_vm0 = vweird.f32 %v925_v29 }
 0x3e5   :  { %vm649_vm2 = vmor %vm647_vm1, %vm648_vm0 }
 0x3e6   :  { %v644_v31 = vsub.f32 1.0, %v643_v30 }
 0x3e8   :  { %v645_v33 = vmul.f32 %v925_v29, %v644_v31 }
 0x3ea   :  { %v646_v35 = vadd.f32 %v925_v29, %v645_v33 }
 0x3ec   :  { %v650_v37 = vsel %vm649_vm2, %v925_v29, %v646_v35 }
 0x3ed   :  { %v655_v38 = vsel %vm652_vm4, %v654_v36, %v650_v37 }
 0x3ee   :  { %658 = vst.msk [vmem:[%s1244_s15] sm:$0xff] %vm657_vm3, %v655_v38 }
 0x3ef   :  { %663 = vsyncpa [#allocation4], 1 }
 0x3f0   :  { %664 = vsyncpa [#allocation6], 1 }
 0x3f1   :  { %665 = vsyncpa [#allocation9], 1 }

</bundles_post_ra>
